<compile_context>
chip_gen: v5e
topology: v5e:2x2
jax: 0.10.0
libtpu: 0.0.40
codegen_flags: <defaults>
</compile_context>

<pallas_src>
import functools

import jax
import jax.numpy as jnp
from jax.experimental import pallas as pl
from jax.experimental.pallas import tpu as pltpu


# ----------------------------- Pallas kernels -----------------------------

def _conv_stats_kernel(xb_ref, wk_ref, conv_ref, stat_ref, *, kh_n, oh_blk, owh):
    # xb_ref:   ((oh_blk+KH-1)*OWH, (KW+1)*Cin)  bf16 packed padded rows for one row block
    # wk_ref:   (KH, (KW+1)*Cin, 2*Cpad)         bf16 per-kh weights; lanes = (w-parity, chan)
    # conv_ref: (oh_blk*OWH, 2*Cpad)             f32 conv rows; lanes = (w-parity, chan)
    # stat_ref: (2, 2*Cpad)                      f32 [column sum ; centered sum of squares]
    rows = oh_blk * owh
    acc = None
    for kh in range(kh_n):                               # only KH matmuls (kw folded into K)
        lhs = xb_ref[kh * owh:(kh + oh_blk) * owh, :]    # sublane-aligned static slice
        part = jnp.dot(lhs, wk_ref[kh], preferred_element_type=jnp.float32)
        acc = part if acc is None else acc + part        # register/VMEM-value accumulation
    conv_ref[...] = acc.astype(conv_ref.dtype)           # single store, no per-tap RMW
    # per-block BN partials from the live accumulator (centered -> no E[x^2]-E[x]^2 cancel)
    col_sum = jnp.sum(acc, axis=0, keepdims=True)
    centered = acc - col_sum * (1.0 / rows)
    stat_ref[0:1, :] = col_sum
    stat_ref[1:2, :] = jnp.sum(centered * centered, axis=0, keepdims=True)


def _bn_relu_pool_kernel(x_ref, scale_ref, shift_ref, o_ref, *, owh, cpad):
    # x_ref: (rows_blk*OWH, 2*Cpad) flat conv rows ordered (image_row, ow_pair)
    y = jnp.maximum(x_ref[...] * scale_ref[...] + shift_ref[...], 0.0)   # BN affine + ReLU
    r2 = y.shape[0] // (2 * owh)
    y = y.reshape(r2, 2, owh, y.shape[-1])       # (row-pair, h-parity, ow-pair, 2*Cpad); 8-aligned
    zh = jnp.maximum(y[:, 0], y[:, 1])           # 2x2 pool: max over h-parity ...
    o_ref[...] = jnp.maximum(zh[..., :cpad], zh[..., cpad:])   # ... then w-parity (lane halves)


def _bn_relu_kernel(x_ref, scale_ref, shift_ref, o_ref):
    o_ref[...] = jnp.maximum(x_ref[...] * scale_ref[...] + shift_ref[...], 0.0)


# ------------------------------ tiling helpers ------------------------------

def _pick_oh_block(oh, n_imgs, row_bytes, cap_bytes, min_steps=4):
    """Largest divisor of OH under the byte cap, shrunk until the grid has enough steps."""
    divisors = [d for d in range(1, oh + 1) if oh % d == 0]
    fitting = [d for d in divisors if d * row_bytes <= cap_bytes] or divisors[:1]
    best = fitting[-1]
    while n_imgs * (oh // best) < min_steps:
        smaller = [d for d in fitting if d < best]
        if not smaller:
            break
        best = smaller[-1]
    return best


def _pick_rows_block(total, multiple, cap):
    """Row-block (multiple of `multiple`, <= cap) + padded total.

    Prefers an exact divisor of `total`; pads instead when the factorization would
    force a tiny block (the 'prime N*OH' perf cliff)."""
    cap = max(multiple, min(cap - cap % multiple, total))
    best = multiple
    d = multiple
    while d <= cap:
        if total % d == 0:
            best = d
        d += multiple
    if best * 4 >= cap or best == total:
        return best, total
    blk = cap
    return blk, ((total + blk - 1) // blk) * blk


# ------------------------------ host wrapper -------------------------------

def conv_block_forward(x_nchw, params, *, stride=1, max_pool=1, eps=1e-5):
    """Forward pass of ConvBlock.  x_nchw: (N, Cin, H, W) float32 -> NCHW output."""
    w = params["w"]                       # (Cout, Cin, KH, KW)
    gamma, beta = params["gamma"], params["beta"]
    # NOTE: params["b"] (conv bias) is intentionally unused: a per-channel constant is
    # exactly cancelled by the train-mode (batch-statistics) BatchNorm that follows.
    # If reused with eval-mode running stats, fold the bias into `shift` instead.
    N, Cin, H, W = x_nchw.shape
    Cout, _, KH, KW = w.shape
    pad = 1
    assert stride == 1  # TODO(synk): stride != 1 is not implemented in the packed-pair conv path.
    OH = H + 2 * pad - KH + 1
    OW = W + 2 * pad - KW + 1
    assert OW % 2 == 0, "packed w-pair layout needs an even output width"
    OWH = OW // 2
    # TODO(synk): pad OW with masked columns to lift the OW % 16 == 0 restriction.
    assert OWH % 8 == 0, "need OW % 16 == 0 so (oh, ow-pair) row merges stay 8-sublane aligned"
    if max_pool == 1:
        assert OH % 2 == 0
    Cpad = ((Cout + 127) // 128) * 128            # lane-dense channel padding
    Kin = (KW + 1) * Cin                          # contraction dim: (window-col, cin)
    Hp = H + 2 * pad
    M = N * OH * OW                               # BN reduction count
    f32, bf16 = jnp.float32, jnp.bfloat16

    # ---- host glue: w-pair window packing (2x input, not a KH*KW im2col) ----
    # xw[n, h, owp, j*Cin+ci] = padded_x[n, h, 2*owp + j, ci], j in 0..KW
    x = jnp.transpose(x_nchw, (0, 2, 3, 1)).astype(f32)              # NHWC
    xp = jnp.pad(x, ((0, 0), (pad, pad), (pad, pad), (0, 0)))        # (N, Hp, Wp, Cin)
    xw = jnp.stack([xp[:, :, j:j + OW:2, :] for j in range(KW + 1)], axis=3)
    xw = xw.reshape(N, Hp, OWH, Kin)

    # ---- output-row tiling (keeps per-step VMEM small; enough grid steps for v7x) ----
    conv_row_bytes = OWH * 2 * Cpad * 4 + OWH * Kin * 2
    oh_blk = _pick_oh_block(OH, N, conv_row_bytes, cap_bytes=2 << 20, min_steps=4)
    NRB = OH // oh_blk
    halo = oh_blk + KH - 1
    B = N * NRB

    # per-row-block slabs with a (KH-1)-row halo, flattened and cast to bf16 (MXU operands)
    xb = jnp.stack([xw[:, r * oh_blk:r * oh_blk + halo] for r in range(NRB)], axis=1)
    xb = xb.reshape(B, halo * OWH, Kin).astype(bf16)

    # per-kh weights, both output w-parities side by side on the lane axis:
    # wk[kh, j*Cin+ci, q*Cpad+co] = w[co, ci, kh, j-q]  (zero where j-q out of range)
    wt = jnp.transpose(w, (2, 3, 1, 0)).astype(f32)                  # (KH, KW, Cin, Cout)
    wt = jnp.pad(wt, ((0, 0), (0, 0), (0, 0), (0, Cpad - Cout)))
    wk = jnp.zeros((KH, KW + 1, Cin, 2, Cpad), f32)
    wk = wk.at[:, :KW, :, 0, :].set(wt)                              # even output columns
    wk = wk.at[:, 1:, :, 1, :].set(wt)                               # odd output columns
    wk = wk.reshape(KH, Kin, 2 * Cpad).astype(bf16)

    # ---- Pallas kernel 1: row-block conv GEMM (bf16 in, f32 acc) + fused BN partials ----
    conv_flops = 2 * B * oh_blk * OWH * Kin * 2 * Cpad * KH
    conv_bytes = xb.size * 2 + wk.size * 2 + B * oh_blk * OWH * 2 * Cpad * 4
    conv, stats = pl.pallas_call(
        functools.partial(_conv_stats_kernel, kh_n=KH, oh_blk=oh_blk, owh=OWH),
        out_shape=(
            jax.ShapeDtypeStruct((B * oh_blk * OWH, 2 * Cpad), f32),  # packed conv rows
            jax.ShapeDtypeStruct((B, 2, 2 * Cpad), f32),              # per-block (sum, M2)
        ),
        grid=(B,),
        in_specs=[
            pl.BlockSpec((None, halo * OWH, Kin), lambda b: (b, 0, 0)),
            pl.BlockSpec((KH, Kin, 2 * Cpad), lambda b: (0, 0, 0)),
        ],
        out_specs=(
            pl.BlockSpec((oh_blk * OWH, 2 * Cpad), lambda b: (b, 0)),
            pl.BlockSpec((None, 2, 2 * Cpad), lambda b: (b, 0, 0)),
        ),
        compiler_params=pltpu.CompilerParams(
            dimension_semantics=("parallel",), vmem_limit_bytes=48 * 1024 * 1024),
        cost_estimate=pl.CostEstimate(
            flops=conv_flops, transcendentals=0, bytes_accessed=conv_bytes),
    )(xb, wk)

    # ---- tiny per-channel BN scalar math on host (parallel-variance combination) ----
    nrows = oh_blk * OWH                                  # rows per (block, parity) sub-block
    sums = stats[:, 0, :].reshape(B * 2, Cpad)            # fold w-parity lane halves
    m2s = stats[:, 1, :].reshape(B * 2, Cpad)
    mean = jnp.sum(sums, axis=0) / M
    mean_b = sums / nrows
    var = (jnp.sum(m2s, axis=0) + nrows * jnp.sum((mean_b - mean) ** 2, axis=0)) / M
    gamma_p = jnp.pad(gamma.astype(f32), (0, Cpad - Cout))
    beta_p = jnp.pad(beta.astype(f32), (0, Cpad - Cout))
    scale = gamma_p * jax.lax.rsqrt(var + eps)
    shift = beta_p - mean * scale
    scale2 = jnp.tile(scale, 2).reshape(1, 2 * Cpad)      # replicate for (w-parity, chan) lanes
    shift2 = jnp.tile(shift, 2).reshape(1, 2 * Cpad)

    # ---- Pallas kernel 2: fused BN affine + ReLU (+ 2x2 max-pool); ~4 MiB row tiles ----
    row_bytes = OWH * 2 * Cpad * 4                        # one conv image-row (f32)
    cap_rows = max(2, (4 << 20) // row_bytes)             # v6e could go 6-8 MiB; v7x 2-4 MiB
    total_rows = N * OH
    ew_params = pltpu.CompilerParams(
        dimension_semantics=("parallel",), vmem_limit_bytes=48 * 1024 * 1024)

    if max_pool == 1:
        rows_blk, padded_rows = _pick_rows_block(total_rows, 2, cap_rows)
        conv_in = conv
        if padded_rows != total_rows:                     # avoid tiny-tile perf cliff
            conv_in = jnp.pad(conv, ((0, (padded_rows - total_rows) * OWH), (0, 0)))
        ew_bytes = padded_rows * OWH * 2 * Cpad * 4 + (padded_rows // 2) * OWH * Cpad * 4
        out = pl.pallas_call(
            functools.partial(_bn_relu_pool_kernel, owh=OWH, cpad=Cpad),
            out_shape=jax.ShapeDtypeStruct((padded_rows // 2, OWH, Cpad), f32),
            grid=(padded_rows // rows_blk,),
            in_specs=[
                pl.BlockSpec((rows_blk * OWH, 2 * Cpad), lambda i: (i, 0)),
                pl.BlockSpec((1, 2 * Cpad), lambda i: (0, 0)),
                pl.BlockSpec((1, 2 * Cpad), lambda i: (0, 0)),
            ],
            out_specs=pl.BlockSpec((rows_blk // 2, OWH, Cpad), lambda i: (i, 0, 0)),
            compiler_params=ew_params,
            cost_estimate=pl.CostEstimate(
                flops=4 * padded_rows * OWH * 2 * Cpad, transcendentals=0,
                bytes_accessed=ew_bytes),
        )(conv_in, scale2, shift2)
        out = out[:total_rows // 2].reshape(N, OH // 2, OWH, Cpad)[..., :Cout]
        return jnp.transpose(out, (0, 3, 1, 2))                      # back to NCHW
    else:
        rows_blk, padded_rows = _pick_rows_block(total_rows, 1, cap_rows)
        conv_in = conv
        if padded_rows != total_rows:
            conv_in = jnp.pad(conv, ((0, (padded_rows - total_rows) * OWH), (0, 0)))
        ew_bytes = 2 * padded_rows * OWH * 2 * Cpad * 4
        out = pl.pallas_call(
            _bn_relu_kernel,
            out_shape=jax.ShapeDtypeStruct((padded_rows * OWH, 2 * Cpad), f32),
            grid=(padded_rows // rows_blk,),
            in_specs=[
                pl.BlockSpec((rows_blk * OWH, 2 * Cpad), lambda i: (i, 0)),
                pl.BlockSpec((1, 2 * Cpad), lambda i: (0, 0)),
                pl.BlockSpec((1, 2 * Cpad), lambda i: (0, 0)),
            ],
            out_specs=pl.BlockSpec((rows_blk * OWH, 2 * Cpad), lambda i: (i, 0)),
            compiler_params=ew_params,
            cost_estimate=pl.CostEstimate(
                flops=2 * padded_rows * OWH * 2 * Cpad, transcendentals=0,
                bytes_accessed=ew_bytes),
        )(conv_in, scale2, shift2)
        out = out[:total_rows * OWH].reshape(N, OH, OWH, 2, Cpad)[..., :Cout]
        out = out.reshape(N, OH, OW, Cout)
        return jnp.transpose(out, (0, 3, 1, 2))                      # back to NCHW


# ------------------------------ pure-JAX reference ------------------------------

def _reference(x, params, *, stride, max_pool, eps=1e-5):
    w, b = params["w"], params["b"]
    y = jax.lax.conv_general_dilated(
        x, w, (stride, stride), ((1, 1), (1, 1)),
        dimension_numbers=("NCHW", "OIHW", "NCHW"))
    y = y + b.reshape(1, -1, 1, 1)
    mean = y.mean(axis=(0, 2, 3), keepdims=True)
    var = y.var(axis=(0, 2, 3), keepdims=True)           # biased, as in torch BN forward
    y = (y - mean) * jax.lax.rsqrt(var + eps)
    y = y * params["gamma"].reshape(1, -1, 1, 1) + params["beta"].reshape(1, -1, 1, 1)
    y = jnp.maximum(y, 0.0)
    if max_pool == 1:
        y = jax.lax.reduce_window(y, -jnp.inf, jax.lax.max,
                                  (1, 1, 2, 2), (1, 1, 2, 2), "VALID")
    return y


# ------------------------------------ main ------------------------------------

if __name__ == "__main__":
    # ConvBlock(in_channels=4, out_channels=8, kernel_size=3, stride=1, max_pool=1)
    N, Cin, H, W = 2, 4, 16, 16
    Cout, KH, KW, stride, max_pool = 8, 3, 3, 1, 1

    key = jax.random.PRNGKey(0)
    k_x, k_w, k_b = jax.random.split(key, 3)
    x = jax.random.normal(k_x, (N, Cin, H, W), dtype=jnp.float32)
    params = {
        "w": jax.random.normal(k_w, (Cout, Cin, KH, KW), dtype=jnp.float32) * 0.1,
        "b": jax.random.normal(k_b, (Cout,), dtype=jnp.float32) * 0.1,
        "gamma": jnp.ones((Cout,), dtype=jnp.float32),   # torch BatchNorm2d default init
        "beta": jnp.zeros((Cout,), dtype=jnp.float32),
    }

    fwd = jax.jit(functools.partial(conv_block_forward, stride=stride, max_pool=max_pool))
    out = jax.block_until_ready(fwd(x, params))

    ref = jax.block_until_ready(_reference(x, params, stride=stride, max_pool=max_pool))
    assert out.shape == ref.shape, (out.shape, ref.shape)
    # bf16 MXU operands (with f32 accumulation) vs. the all-f32 reference conv: after BN
    # normalization the worst-case per-element error is ~1e-2, hence the 2e-2 tolerance.
    assert jnp.allclose(out, ref, rtol=2e-2, atol=2e-2), float(jnp.max(jnp.abs(out - ref)))

    print("KERNEL_OK")
</pallas_src>

<mosaic_0001>
module attributes {stable_mosaic.version = 11 : i64} {
  func.func @_conv_stats_kernel(%arg0: i32, %arg1: memref<1x80x16xbf16, #tpu.memory_space<vmem>>, %arg2: memref<3x16x256xbf16, #tpu.memory_space<vmem>>, %arg3: memref<64x256xf32, #tpu.memory_space<vmem>>, %arg4: memref<1x2x256xf32, #tpu.memory_space<vmem>>) attributes {dimension_semantics = [#tpu.dimension_semantics<parallel>], iteration_bounds = array<i64: 4>, scalar_prefetch = 0 : i64, scratch_operands = 0 : i64, tpu.core_type = #tpu.core_type<tc>, window_params = [{transform_indices = @transform_0, window_bounds = array<i64: 1, 80, 16>}, {pipeline_mode = #tpu.pipeline_mode<synchronous>, transform_indices = @transform_1, window_bounds = array<i64: 3, 16, 256>}, {transform_indices = @transform_2, window_bounds = array<i64: 64, 256>}, {transform_indices = @transform_3, window_bounds = array<i64: 1, 2, 256>}]} {
    %c0 = arith.constant 0 : index
    %c0_0 = arith.constant 0 : index
    %c0_1 = arith.constant 0 : index
    %0 = vector.load %arg1[%c0, %c0_0, %c0_1] : memref<1x80x16xbf16, #tpu.memory_space<vmem>>, vector<1x64x16xbf16>
    %1 = vector.shape_cast %0 : vector<1x64x16xbf16> to vector<64x16xbf16>
    %c0_2 = arith.constant 0 : index
    %c0_3 = arith.constant 0 : index
    %c0_4 = arith.constant 0 : index
    %2 = vector.load %arg2[%c0_2, %c0_3, %c0_4] : memref<3x16x256xbf16, #tpu.memory_space<vmem>>, vector<1x16x256xbf16>
    %3 = vector.shape_cast %2 : vector<1x16x256xbf16> to vector<16x256xbf16>
    %cst = arith.constant dense<0.000000e+00> : vector<64x256xf32>
    %4 = tpu.matmul %1, %3, %cst {dimension_numbers = #tpu.dot_dimension_numbers<[1], [0], [0], [1], [0, 0, 1, 1], [], []>} : vector<64x16xbf16>, vector<16x256xbf16>, vector<64x256xf32> -> vector<64x256xf32>
    %c0_5 = arith.constant 0 : index
    %c8 = arith.constant 8 : index
    %c0_6 = arith.constant 0 : index
    %5 = vector.load %arg1[%c0_5, %c8, %c0_6] : memref<1x80x16xbf16, #tpu.memory_space<vmem>>, vector<1x64x16xbf16>
    %6 = vector.shape_cast %5 : vector<1x64x16xbf16> to vector<64x16xbf16>
    %c1 = arith.constant 1 : index
    %c0_7 = arith.constant 0 : index
    %c0_8 = arith.constant 0 : index
    %7 = vector.load %arg2[%c1, %c0_7, %c0_8] : memref<3x16x256xbf16, #tpu.memory_space<vmem>>, vector<1x16x256xbf16>
    %8 = vector.shape_cast %7 : vector<1x16x256xbf16> to vector<16x256xbf16>
    %cst_9 = arith.constant dense<0.000000e+00> : vector<64x256xf32>
    %9 = tpu.matmul %6, %8, %cst_9 {dimension_numbers = #tpu.dot_dimension_numbers<[1], [0], [0], [1], [0, 0, 1, 1], [], []>} : vector<64x16xbf16>, vector<16x256xbf16>, vector<64x256xf32> -> vector<64x256xf32>
    %10 = arith.addf %4, %9 : vector<64x256xf32>
    %c0_10 = arith.constant 0 : index
    %c16 = arith.constant 16 : index
    %c0_11 = arith.constant 0 : index
    %11 = vector.load %arg1[%c0_10, %c16, %c0_11] : memref<1x80x16xbf16, #tpu.memory_space<vmem>>, vector<1x64x16xbf16>
    %12 = vector.shape_cast %11 : vector<1x64x16xbf16> to vector<64x16xbf16>
    %c2 = arith.constant 2 : index
    %c0_12 = arith.constant 0 : index
    %c0_13 = arith.constant 0 : index
    %13 = vector.load %arg2[%c2, %c0_12, %c0_13] : memref<3x16x256xbf16, #tpu.memory_space<vmem>>, vector<1x16x256xbf16>
    %14 = vector.shape_cast %13 : vector<1x16x256xbf16> to vector<16x256xbf16>
    %cst_14 = arith.constant dense<0.000000e+00> : vector<64x256xf32>
    %15 = tpu.matmul %12, %14, %cst_14 {dimension_numbers = #tpu.dot_dimension_numbers<[1], [0], [0], [1], [0, 0, 1, 1], [], []>} : vector<64x16xbf16>, vector<16x256xbf16>, vector<64x256xf32> -> vector<64x256xf32>
    %16 = arith.addf %10, %15 : vector<64x256xf32>
    %c0_15 = arith.constant 0 : index
    %c0_16 = arith.constant 0 : index
    %17 = vector.load %arg3[%c0_15, %c0_16] : memref<64x256xf32, #tpu.memory_space<vmem>>, vector<64x256xf32>
    tpu.vector_store %arg3[%c0_15, %c0_16], %16 {strides = array<i32>} : memref<64x256xf32, #tpu.memory_space<vmem>>, vector<64x256xf32>,
    %cst_17 = arith.constant dense<0.000000e+00> : vector<256xf32>
    %18 = vector.multi_reduction <add>, %16, %cst_17 [0] : vector<64x256xf32> to vector<256xf32>
    %19 = vector.shape_cast %18 : vector<256xf32> to vector<1x256xf32>
    %cst_18 = arith.constant 1.562500e-02 : f32
    %20 = vector.broadcast %cst_18 : f32 to vector<1x256xf32>
    %21 = arith.mulf %19, %20 : vector<1x256xf32>
    %22 = vector.broadcast %21 : vector<1x256xf32> to vector<64x256xf32>
    %23 = arith.subf %16, %22 : vector<64x256xf32>
    %c0_19 = arith.constant 0 : index
    %c0_20 = arith.constant 0 : index
    %c0_21 = arith.constant 0 : index
    %24 = vector.load %arg4[%c0_19, %c0_20, %c0_21] : memref<1x2x256xf32, #tpu.memory_space<vmem>>, vector<1x1x256xf32>
    %25 = vector.shape_cast %24 : vector<1x1x256xf32> to vector<1x256xf32>
    %26 = vector.shape_cast %19 : vector<1x256xf32> to vector<1x1x256xf32>
    tpu.vector_store %arg4[%c0_19, %c0_20, %c0_21], %26 {strides = array<i32>} : memref<1x2x256xf32, #tpu.memory_space<vmem>>, vector<1x1x256xf32>,
    %27 = arith.mulf %23, %23 : vector<64x256xf32>
    %cst_22 = arith.constant dense<0.000000e+00> : vector<256xf32>
    %28 = vector.multi_reduction <add>, %27, %cst_22 [0] : vector<64x256xf32> to vector<256xf32>
    %29 = vector.shape_cast %28 : vector<256xf32> to vector<1x256xf32>
    %c0_23 = arith.constant 0 : index
    %c1_24 = arith.constant 1 : index
    %c0_25 = arith.constant 0 : index
    %30 = vector.load %arg4[%c0_23, %c1_24, %c0_25] : memref<1x2x256xf32, #tpu.memory_space<vmem>>, vector<1x1x256xf32>
    %31 = vector.shape_cast %30 : vector<1x1x256xf32> to vector<1x256xf32>
    %32 = vector.shape_cast %29 : vector<1x256xf32> to vector<1x1x256xf32>
    tpu.vector_store %arg4[%c0_23, %c1_24, %c0_25], %32 {strides = array<i32>} : memref<1x2x256xf32, #tpu.memory_space<vmem>>, vector<1x1x256xf32>,
    return
  }
  func.func @transform_0(%arg0: i32) -> (i32, i32, i32) {
    %c0_i32 = arith.constant 0 : i32
    %c0_i32_0 = arith.constant 0 : i32
    %c0_i32_1 = arith.constant 0 : i32
    return %arg0, %c0_i32, %c0_i32_0 : i32, i32, i32
  }
  func.func @transform_1(%arg0: i32) -> (i32, i32, i32) {
    %c0_i32 = arith.constant 0 : i32
    %c0_i32_0 = arith.constant 0 : i32
    %c0_i32_1 = arith.constant 0 : i32
    %c0_i32_2 = arith.constant 0 : i32
    return %c0_i32, %c0_i32_0, %c0_i32_1 : i32, i32, i32
  }
  func.func @transform_2(%arg0: i32) -> (i32, i32) {
    %c0_i32 = arith.constant 0 : i32
    %c0_i32_0 = arith.constant 0 : i32
    return %arg0, %c0_i32 : i32, i32
  }
  func.func @transform_3(%arg0: i32) -> (i32, i32, i32) {
    %c0_i32 = arith.constant 0 : i32
    %c0_i32_0 = arith.constant 0 : i32
    %c0_i32_1 = arith.constant 0 : i32
    return %arg0, %c0_i32, %c0_i32_0 : i32, i32, i32
  }
}

module attributes {stable_mosaic.version = 11 : i64} {
  func.func @_bn_relu_pool_kernel(%arg0: i32, %arg1: memref<256x256xf32, #tpu.memory_space<vmem>>, %arg2: memref<1x256xf32, #tpu.memory_space<vmem>>, %arg3: memref<1x256xf32, #tpu.memory_space<vmem>>, %arg4: memref<16x8x128xf32, #tpu.memory_space<vmem>>) attributes {dimension_semantics = [#tpu.dimension_semantics<parallel>], iteration_bounds = array<i64: 1>, scalar_prefetch = 0 : i64, scratch_operands = 0 : i64, tpu.core_type = #tpu.core_type<tc>, window_params = [{transform_indices = @transform_0, window_bounds = array<i64: 256, 256>}, {pipeline_mode = #tpu.pipeline_mode<synchronous>, transform_indices = @transform_1, window_bounds = array<i64: 1, 256>}, {pipeline_mode = #tpu.pipeline_mode<synchronous>, transform_indices = @transform_2, window_bounds = array<i64: 1, 256>}, {transform_indices = @transform_3, window_bounds = array<i64: 16, 8, 128>}]} {
    %c0 = arith.constant 0 : index
    %c0_0 = arith.constant 0 : index
    %0 = vector.load %arg1[%c0, %c0_0] : memref<256x256xf32, #tpu.memory_space<vmem>>, vector<256x256xf32>
    %c0_1 = arith.constant 0 : index
    %c0_2 = arith.constant 0 : index
    %1 = vector.load %arg2[%c0_1, %c0_2] : memref<1x256xf32, #tpu.memory_space<vmem>>, vector<1x256xf32>
    %2 = vector.broadcast %1 : vector<1x256xf32> to vector<256x256xf32>
    %3 = arith.mulf %0, %2 : vector<256x256xf32>
    %c0_3 = arith.constant 0 : index
    %c0_4 = arith.constant 0 : index
    %4 = vector.load %arg3[%c0_3, %c0_4] : memref<1x256xf32, #tpu.memory_space<vmem>>, vector<1x256xf32>
    %5 = vector.broadcast %4 : vector<1x256xf32> to vector<256x256xf32>
    %6 = arith.addf %3, %5 : vector<256x256xf32>
    %cst = arith.constant 0.000000e+00 : f32
    %7 = vector.broadcast %cst : f32 to vector<256x256xf32>
    %8 = arith.maximumf %6, %7 : vector<256x256xf32>
    %9 = vector.shape_cast %8 : vector<256x256xf32> to vector<16x2x8x256xf32>
    %10 = vector.extract_strided_slice %9 {offsets = [0, 0, 0, 0], sizes = [16, 1, 8, 256], strides = [1, 1, 1, 1]} : vector<16x2x8x256xf32> to vector<16x1x8x256xf32>
    %11 = vector.shape_cast %10 : vector<16x1x8x256xf32> to vector<16x8x256xf32>
    %12 = vector.extract_strided_slice %9 {offsets = [0, 1, 0, 0], sizes = [16, 1, 8, 256], strides = [1, 1, 1, 1]} : vector<16x2x8x256xf32> to vector<16x1x8x256xf32>
    %13 = vector.shape_cast %12 : vector<16x1x8x256xf32> to vector<16x8x256xf32>
    %14 = arith.maximumf %11, %13 : vector<16x8x256xf32>
    %15 = vector.extract_strided_slice %14 {offsets = [0, 0, 0], sizes = [16, 8, 128], strides = [1, 1, 1]} : vector<16x8x256xf32> to vector<16x8x128xf32>
    %16 = vector.extract_strided_slice %14 {offsets = [0, 0, 128], sizes = [16, 8, 128], strides = [1, 1, 1]} : vector<16x8x256xf32> to vector<16x8x128xf32>
    %17 = arith.maximumf %15, %16 : vector<16x8x128xf32>
    %c0_5 = arith.constant 0 : index
    %c0_6 = arith.constant 0 : index
    %c0_7 = arith.constant 0 : index
    %18 = vector.load %arg4[%c0_5, %c0_6, %c0_7] : memref<16x8x128xf32, #tpu.memory_space<vmem>>, vector<16x8x128xf32>
    tpu.vector_store %arg4[%c0_5, %c0_6, %c0_7], %17 {strides = array<i32>} : memref<16x8x128xf32, #tpu.memory_space<vmem>>, vector<16x8x128xf32>,
    return
  }
  func.func @transform_0(%arg0: i32) -> (i32, i32) {
    %c0_i32 = arith.constant 0 : i32
    %c0_i32_0 = arith.constant 0 : i32
    return %arg0, %c0_i32 : i32, i32
  }
  func.func @transform_1(%arg0: i32) -> (i32, i32) {
    %c0_i32 = arith.constant 0 : i32
    %c0_i32_0 = arith.constant 0 : i32
    %c0_i32_1 = arith.constant 0 : i32
    return %c0_i32, %c0_i32_0 : i32, i32
  }
  func.func @transform_2(%arg0: i32) -> (i32, i32) {
    %c0_i32 = arith.constant 0 : i32
    %c0_i32_0 = arith.constant 0 : i32
    %c0_i32_1 = arith.constant 0 : i32
    return %c0_i32, %c0_i32_0 : i32, i32
  }
  func.func @transform_3(%arg0: i32) -> (i32, i32, i32) {
    %c0_i32 = arith.constant 0 : i32
    %c0_i32_0 = arith.constant 0 : i32
    %c0_i32_1 = arith.constant 0 : i32
    return %arg0, %c0_i32, %c0_i32_0 : i32, i32, i32
  }
}

</mosaic_0001>

<bundles_post_ra>
// kernel: tile.18
= control target key start
LH: loop header
LB: loop body
LE: loop exit
PB: predicated region body
PF: predicated region fallthrough
CT: control target
= control target key end

     0   :  { %s22_s0 = inlined_call_operand.vmem [shape: f32[128], index: 0, kind: input, shape index: {}]   ;;  %s23_s1 = inlined_call_operand.vmem [shape: f32[2,128], index: 1, kind: output, shape index: {}]  }
   0x1   :  { %v4_v0 = vld [vmem:[%s22_s0] ss:$0 sm:$0xff] }
   0x2   :  { %5 = vst [vmem:[%s23_s1] sm:$0x3] %v4_v0 }

// kernel: conv_block_forward.3
= control target key start
LH: loop header
LB: loop body
LE: loop exit
PB: predicated region body
PF: predicated region fallthrough
CT: control target
= control target key end

     0   :  { %s752_s0 = inlined_call_operand.vmem [shape: f32[256,256], index: 0, kind: input, shape index: {}]   ;;  %s753_s1 = inlined_call_operand.vmem [shape: f32[1,256], index: 1, kind: input, shape index: {}]   ;;  %s754_s2 = inlined_call_operand.vmem [shape: f32[1,256], index: 2, kind: input, shape index: {}]   ;;  %s755_s3 = inlined_call_operand.vmem [shape: f32[16,8,128], index: 3, kind: output, shape index: {}]  }
   0x1   :  { %v14_v0 = vld [vmem:[%s752_s0] sm:$0xff]  ;;  %v15_v1 = vld [vmem:[%s752_s0 + $0x8] sm:$0xff]  ;;  %v16_v2 = vld [vmem:[%s752_s0 + $0x10] sm:$0xff] }
   0x2   :  { %v17_v3 = vld [vmem:[%s752_s0 + $0x18] sm:$0xff]  ;;  %v78_v4 = vld [vmem:[%s753_s1] sm:$0x3]  ;;  %v19_v11 = vld [vmem:[%s752_s0 + $0x28] sm:$0xff] }
   0x3   :  { %v148_v5 = vld [vmem:[%s754_s2] sm:$0x3]  ;;  %v388_v6 = vperm.slane %v78_v4, 0  ;;  %v390_v7 = vperm.slane %v78_v4, 1  ;;  %v20_v12 = vld [vmem:[%s752_s0 + $0x30] sm:$0xff]  ;;  %v21_v13 = vld [vmem:[%s752_s0 + $0x38] sm:$0xff] }
   0x4   :  { %v392_v8 = vperm.slane %v148_v5, 0  ;;  %v394_v9 = vperm.slane %v148_v5, 1  ;;  %v18_v10 = vld [vmem:[%s752_s0 + $0x20] sm:$0xff]  ;;  %v23_v31 = vld [vmem:[%s752_s0 + $0x48] sm:$0xff]  ;;  %v24_v36 = vld [vmem:[%s752_s0 + $0x50] sm:$0xff] }
   0x5   :  { %v84_v14 = vmul.f32 %v388_v6, %v14_v0  ;;  %v85_v15 = vmul.f32 %v390_v7, %v15_v1  ;;  %v86_v16 = vmul.f32 %v388_v6, %v16_v2  ;;  %v87_v17 = vmul.f32 %v390_v7, %v17_v3  ;;  %v22_v30 = vld [vmem:[%s752_s0 + $0x40] sm:$0xff]  ;;  %v25_v37 = vld [vmem:[%s752_s0 + $0x58] sm:$0xff]  ;;  %v27_v47 = vld [vmem:[%s752_s0 + $0x68] sm:$0xff] }
   0x6   :  { %v88_v18 = vmul.f32 %v388_v6, %v18_v10  ;;  %v89_v19 = vmul.f32 %v390_v7, %v19_v11  ;;  %v90_v20 = vmul.f32 %v388_v6, %v20_v12  ;;  %v91_v21 = vmul.f32 %v390_v7, %v21_v13  ;;  %v26_v42 = vld [vmem:[%s752_s0 + $0x60] sm:$0xff]  ;;  %v28_v52 = vld [vmem:[%s752_s0 + $0x70] sm:$0xff]  ;;  %v29_v53 = vld [vmem:[%s752_s0 + $0x78] sm:$0xff] }
   0x7   :  { %v154_v22 = vadd.f32 %v392_v8, %v84_v14  ;;  %v155_v23 = vadd.f32 %v394_v9, %v85_v15  ;;  %v156_v24 = vadd.f32 %v392_v8, %v86_v16  ;;  %v157_v25 = vadd.f32 %v394_v9, %v87_v17  ;;  %v30_v62 = vld [vmem:[%s752_s0 + $0x80] sm:$0xff]  ;;  %v31_v63 = vld [vmem:[%s752_s0 + $0x88] sm:$0xff]  ;;  %v32_v12 = vld [vmem:[%s752_s0 + $0x90] sm:$0xff] }
   0x8   :  { %v158_v26 = vadd.f32 %v392_v8, %v88_v18  ;;  %v159_v27 = vadd.f32 %v394_v9, %v89_v19  ;;  %v160_v28 = vadd.f32 %v392_v8, %v90_v20  ;;  %v161_v29 = vadd.f32 %v394_v9, %v91_v21  ;;  %v33_v13 = vld [vmem:[%s752_s0 + $0x98] sm:$0xff]  ;;  %v34_v18 = vld [vmem:[%s752_s0 + $0xa0] sm:$0xff] }
   0x9   :  { %v218_v32 = vmax.f32 %v154_v22, 0.0  ;;  %v219_v33 = vmax.f32 %v155_v23, 0.0  ;;  %v220_v34 = vmax.f32 %v156_v24, 0.0  ;;  %v221_v35 = vmax.f32 %v157_v25, 0.0 }
   0xa   :  { %v222_v38 = vmax.f32 %v158_v26, 0.0  ;;  %v223_v39 = vmax.f32 %v159_v27, 0.0  ;;  %v224_v40 = vmax.f32 %v160_v28, 0.0  ;;  %v225_v41 = vmax.f32 %v161_v29, 0.0  ;;  %v35_v27 = vld [vmem:[%s752_s0 + $0xa8] sm:$0xff]  ;;  %v36_v28 = vld [vmem:[%s752_s0 + $0xb0] sm:$0xff] }
   0xb   :  { %v282_v43 = vmax.f32 %v218_v32, %v220_v34  ;;  %v283_v44 = vmax.f32 %v219_v33, %v221_v35  ;;  %v92_v45 = vmul.f32 %v388_v6, %v22_v30  ;;  %v93_v46 = vmul.f32 %v390_v7, %v23_v31  ;;  %v37_v32 = vld [vmem:[%s752_s0 + $0xb8] sm:$0xff] }
   0xc   :  { %v284_v48 = vmax.f32 %v222_v38, %v224_v40  ;;  %v285_v49 = vmax.f32 %v223_v39, %v225_v41  ;;  %v94_v50 = vmul.f32 %v388_v6, %v24_v36  ;;  %v95_v51 = vmul.f32 %v390_v7, %v25_v37  ;;  %v38_v38 = vld [vmem:[%s752_s0 + $0xc0] sm:$0xff] }
   0xd   :  { %v314_v54 = vmax.f32 %v282_v43, %v283_v44  ;;  %v162_v55 = vadd.f32 %v392_v8, %v92_v45  ;;  %v163_v56 = vadd.f32 %v394_v9, %v93_v46  ;;  %v96_v57 = vmul.f32 %v388_v6, %v26_v42  ;;  %v39_v43 = vld [vmem:[%s752_s0 + $0xc8] sm:$0xff] }
   0xe   :  { %v315_v58 = vmax.f32 %v284_v48, %v285_v49  ;;  %v164_v59 = vadd.f32 %v392_v8, %v94_v50  ;;  %v165_v60 = vadd.f32 %v394_v9, %v95_v51  ;;  %v97_v61 = vmul.f32 %v390_v7, %v27_v47  ;;  %v40_v48 = vld [vmem:[%s752_s0 + $0xd0] sm:$0xff] }
   0xf   :  { %330 = vst [vmem:[%s755_s3] sm:$0xff] %v314_v54  ;;  %v226_v0 = vmax.f32 %v162_v55, 0.0  ;;  %v227_v1 = vmax.f32 %v163_v56, 0.0  ;;  %v98_v2 = vmul.f32 %v388_v6, %v28_v52  ;;  %v99_v3 = vmul.f32 %v390_v7, %v29_v53  ;;  %v41_v52 = vld [vmem:[%s752_s0 + $0xd8] sm:$0xff] }
  0x10   :  { %331 = vst [vmem:[%s755_s3 + $0x8] sm:$0xff] %v315_v58  ;;  %v228_v4 = vmax.f32 %v164_v59, 0.0  ;;  %v229_v5 = vmax.f32 %v165_v60, 0.0  ;;  %v166_v10 = vadd.f32 %v392_v8, %v96_v57  ;;  %v167_v11 = vadd.f32 %v394_v9, %v97_v61  ;;  %v42_v58 = vld [vmem:[%s752_s0 + $0xe0] sm:$0xff] }
  0x11   :  { %v168_v14 = vadd.f32 %v392_v8, %v98_v2  ;;  %v169_v15 = vadd.f32 %v394_v9, %v99_v3  ;;  %v100_v16 = vmul.f32 %v388_v6, %v30_v62  ;;  %v101_v17 = vmul.f32 %v390_v7, %v31_v63  ;;  %v43_v63 = vld [vmem:[%s752_s0 + $0xe8] sm:$0xff] }
  0x12   :  { %v286_v19 = vmax.f32 %v226_v0, %v228_v4  ;;  %v287_v20 = vmax.f32 %v227_v1, %v229_v5  ;;  %v230_v21 = vmax.f32 %v166_v10, 0.0  ;;  %v231_v22 = vmax.f32 %v167_v11, 0.0  ;;  %v44_v4 = vld [vmem:[%s752_s0 + $0xf0] sm:$0xff]  ;;  %v45_v5 = vld [vmem:[%s752_s0 + $0xf8] sm:$0xff] }
  0x13   :  { %v232_v23 = vmax.f32 %v168_v14, 0.0  ;;  %v233_v24 = vmax.f32 %v169_v15, 0.0  ;;  %v102_v25 = vmul.f32 %v388_v6, %v32_v12  ;;  %v103_v26 = vmul.f32 %v390_v7, %v33_v13 }
  0x14   :  { %v316_v29 = vmax.f32 %v286_v19, %v287_v20  ;;  %v170_v30 = vadd.f32 %v392_v8, %v100_v16  ;;  %v171_v31 = vadd.f32 %v394_v9, %v101_v17  ;;  %v104_v33 = vmul.f32 %v388_v6, %v34_v18  ;;  %v46_v18 = vld [vmem:[%s752_s0 + $0x100] sm:$0xff] }
  0x15   :  { %v288_v34 = vmax.f32 %v230_v21, %v232_v23  ;;  %v289_v35 = vmax.f32 %v231_v22, %v233_v24  ;;  %v172_v36 = vadd.f32 %v392_v8, %v102_v25  ;;  %v173_v37 = vadd.f32 %v394_v9, %v103_v26  ;;  %v47_v23 = vld [vmem:[%s752_s0 + $0x108] sm:$0xff] }
  0x16   :  { %332 = vst [vmem:[%s755_s3 + $0x10] sm:$0xff] %v316_v29  ;;  %v234_v39 = vmax.f32 %v170_v30, 0.0  ;;  %v235_v40 = vmax.f32 %v171_v31, 0.0  ;;  %v105_v41 = vmul.f32 %v390_v7, %v35_v27  ;;  %v106_v42 = vmul.f32 %v388_v6, %v36_v28  ;;  %v48_v28 = vld [vmem:[%s752_s0 + $0x110] sm:$0xff]  ;;  %v49_v29 = vld [vmem:[%s752_s0 + $0x118] sm:$0xff] }
  0x17   :  { %v317_v44 = vmax.f32 %v288_v34, %v289_v35  ;;  %v236_v45 = vmax.f32 %v172_v36, 0.0  ;;  %v237_v46 = vmax.f32 %v173_v37, 0.0  ;;  %v107_v47 = vmul.f32 %v390_v7, %v37_v32  ;;  %v50_v34 = vld [vmem:[%s752_s0 + $0x120] sm:$0xff] }
  0x18   :  { %v174_v49 = vadd.f32 %v392_v8, %v104_v33  ;;  %v175_v50 = vadd.f32 %v394_v9, %v105_v41  ;;  %v176_v51 = vadd.f32 %v392_v8, %v106_v42  ;;  %v108_v53 = vmul.f32 %v388_v6, %v38_v38 }
  0x19   :  { %333 = vst [vmem:[%s755_s3 + $0x18] sm:$0xff] %v317_v44  ;;  %v290_v54 = vmax.f32 %v234_v39, %v236_v45  ;;  %v291_v55 = vmax.f32 %v235_v40, %v237_v46  ;;  %v177_v56 = vadd.f32 %v394_v9, %v107_v47  ;;  %v109_v57 = vmul.f32 %v390_v7, %v39_v43  ;;  %v51_v43 = vld [vmem:[%s752_s0 + $0x128] sm:$0xff]  ;;  %v52_v44 = vld [vmem:[%s752_s0 + $0x130] sm:$0xff] }
  0x1a   :  { %v238_v59 = vmax.f32 %v174_v49, 0.0  ;;  %v239_v60 = vmax.f32 %v175_v50, 0.0  ;;  %v240_v61 = vmax.f32 %v176_v51, 0.0  ;;  %v110_v62 = vmul.f32 %v388_v6, %v40_v48  ;;  %v53_v48 = vld [vmem:[%s752_s0 + $0x138] sm:$0xff] }
  0x1b   :  { %v318_v0 = vmax.f32 %v290_v54, %v291_v55  ;;  %v241_v1 = vmax.f32 %v177_v56, 0.0  ;;  %v111_v2 = vmul.f32 %v390_v7, %v41_v52  ;;  %v178_v3 = vadd.f32 %v392_v8, %v108_v53  ;;  %v54_v54 = vld [vmem:[%s752_s0 + $0x140] sm:$0xff] }
  0x1c   :  { %v292_v10 = vmax.f32 %v238_v59, %v240_v61  ;;  %v179_v11 = vadd.f32 %v394_v9, %v109_v57  ;;  %v180_v12 = vadd.f32 %v392_v8, %v110_v62  ;;  %v112_v13 = vmul.f32 %v388_v6, %v42_v58  ;;  %v55_v59 = vld [vmem:[%s752_s0 + $0x148] sm:$0xff] }
  0x1d   :  { %334 = vst [vmem:[%s755_s3 + $0x20] sm:$0xff] %v318_v0  ;;  %v293_v14 = vmax.f32 %v239_v60, %v241_v1  ;;  %v181_v15 = vadd.f32 %v394_v9, %v111_v2  ;;  %v242_v16 = vmax.f32 %v178_v3, 0.0  ;;  %v113_v17 = vmul.f32 %v390_v7, %v43_v63  ;;  %v56_v0 = vld [vmem:[%s752_s0 + $0x150] sm:$0xff] }
  0x1e   :  { %v243_v19 = vmax.f32 %v179_v11, 0.0  ;;  %v244_v20 = vmax.f32 %v180_v12, 0.0  ;;  %v114_v21 = vmul.f32 %v388_v6, %v44_v4  ;;  %v115_v22 = vmul.f32 %v390_v7, %v45_v5  ;;  %v57_v4 = vld [vmem:[%s752_s0 + $0x158] sm:$0xff] }
  0x1f   :  { %v319_v24 = vmax.f32 %v292_v10, %v293_v14  ;;  %v245_v25 = vmax.f32 %v181_v15, 0.0  ;;  %v182_v26 = vadd.f32 %v392_v8, %v112_v13  ;;  %v183_v27 = vadd.f32 %v394_v9, %v113_v17  ;;  %v58_v14 = vld [vmem:[%s752_s0 + $0x160] sm:$0xff] }
  0x20   :  { %v294_v30 = vmax.f32 %v242_v16, %v244_v20  ;;  %v184_v31 = vadd.f32 %v392_v8, %v114_v21  ;;  %v185_v32 = vadd.f32 %v394_v9, %v115_v22  ;;  %v116_v33 = vmul.f32 %v388_v6, %v46_v18 }
  0x21   :  { %335 = vst [vmem:[%s755_s3 + $0x28] sm:$0xff] %v319_v24  ;;  %v295_v35 = vmax.f32 %v243_v19, %v245_v25  ;;  %v246_v36 = vmax.f32 %v182_v26, 0.0  ;;  %v247_v37 = vmax.f32 %v183_v27, 0.0  ;;  %v117_v38 = vmul.f32 %v390_v7, %v47_v23  ;;  %v59_v19 = vld [vmem:[%s752_s0 + $0x168] sm:$0xff]  ;;  %v60_v24 = vld [vmem:[%s752_s0 + $0x170] sm:$0xff]  ;;  %v61_v25 = vld [vmem:[%s752_s0 + $0x178] sm:$0xff] }
  0x22   :  { %v248_v39 = vmax.f32 %v184_v31, 0.0  ;;  %v249_v40 = vmax.f32 %v185_v32, 0.0  ;;  %v118_v41 = vmul.f32 %v388_v6, %v48_v28  ;;  %v119_v42 = vmul.f32 %v390_v7, %v49_v29 }
  0x23   :  { %v320_v45 = vmax.f32 %v294_v30, %v295_v35  ;;  %v186_v46 = vadd.f32 %v392_v8, %v116_v33  ;;  %v187_v47 = vadd.f32 %v394_v9, %v117_v38  ;;  %v120_v49 = vmul.f32 %v388_v6, %v50_v34  ;;  %v62_v34 = vld [vmem:[%s752_s0 + $0x180] sm:$0xff] }
  0x24   :  { %v296_v50 = vmax.f32 %v246_v36, %v248_v39  ;;  %v297_v51 = vmax.f32 %v247_v37, %v249_v40  ;;  %v188_v52 = vadd.f32 %v392_v8, %v118_v41  ;;  %v189_v53 = vadd.f32 %v394_v9, %v119_v42  ;;  %v63_v39 = vld [vmem:[%s752_s0 + $0x188] sm:$0xff] }
  0x25   :  { %336 = vst [vmem:[%s755_s3 + $0x30] sm:$0xff] %v320_v45  ;;  %v250_v55 = vmax.f32 %v186_v46, 0.0  ;;  %v251_v56 = vmax.f32 %v187_v47, 0.0  ;;  %v121_v57 = vmul.f32 %v390_v7, %v51_v43  ;;  %v122_v58 = vmul.f32 %v388_v6, %v52_v44  ;;  %v64_v44 = vld [vmem:[%s752_s0 + $0x190] sm:$0xff]  ;;  %v65_v45 = vld [vmem:[%s752_s0 + $0x198] sm:$0xff] }
  0x26   :  { %v321_v60 = vmax.f32 %v296_v50, %v297_v51  ;;  %v252_v61 = vmax.f32 %v188_v52, 0.0  ;;  %v253_v62 = vmax.f32 %v189_v53, 0.0  ;;  %v123_v63 = vmul.f32 %v390_v7, %v53_v48  ;;  %v66_v50 = vld [vmem:[%s752_s0 + $0x1a0] sm:$0xff] }
  0x27   :  { %v190_v1 = vadd.f32 %v392_v8, %v120_v49  ;;  %v191_v2 = vadd.f32 %v394_v9, %v121_v57  ;;  %v192_v3 = vadd.f32 %v392_v8, %v122_v58  ;;  %v124_v5 = vmul.f32 %v388_v6, %v54_v54 }
  0x28   :  { %337 = vst [vmem:[%s755_s3 + $0x38] sm:$0xff] %v321_v60  ;;  %v298_v10 = vmax.f32 %v250_v55, %v252_v61  ;;  %v299_v11 = vmax.f32 %v251_v56, %v253_v62  ;;  %v193_v12 = vadd.f32 %v394_v9, %v123_v63  ;;  %v125_v13 = vmul.f32 %v390_v7, %v55_v59  ;;  %v67_v59 = vld [vmem:[%s752_s0 + $0x1a8] sm:$0xff]  ;;  %v68_v60 = vld [vmem:[%s752_s0 + $0x1b0] sm:$0xff] }
  0x29   :  { %v254_v15 = vmax.f32 %v190_v1, 0.0  ;;  %v255_v16 = vmax.f32 %v191_v2, 0.0  ;;  %v256_v17 = vmax.f32 %v192_v3, 0.0  ;;  %v126_v18 = vmul.f32 %v388_v6, %v56_v0  ;;  %v69_v0 = vld [vmem:[%s752_s0 + $0x1b8] sm:$0xff] }
  0x2a   :  { %v322_v20 = vmax.f32 %v298_v10, %v299_v11  ;;  %v257_v21 = vmax.f32 %v193_v12, 0.0  ;;  %v127_v22 = vmul.f32 %v390_v7, %v57_v4  ;;  %v194_v23 = vadd.f32 %v392_v8, %v124_v5  ;;  %v70_v10 = vld [vmem:[%s752_s0 + $0x1c0] sm:$0xff] }
  0x2b   :  { %v300_v26 = vmax.f32 %v254_v15, %v256_v17  ;;  %v195_v27 = vadd.f32 %v394_v9, %v125_v13  ;;  %v196_v28 = vadd.f32 %v392_v8, %v126_v18  ;;  %v128_v29 = vmul.f32 %v388_v6, %v58_v14  ;;  %v71_v15 = vld [vmem:[%s752_s0 + $0x1c8] sm:$0xff] }
  0x2c   :  { %338 = vst [vmem:[%s755_s3 + $0x40] sm:$0xff] %v322_v20  ;;  %v301_v30 = vmax.f32 %v255_v16, %v257_v21  ;;  %v197_v31 = vadd.f32 %v394_v9, %v127_v22  ;;  %v258_v32 = vmax.f32 %v194_v23, 0.0  ;;  %v129_v33 = vmul.f32 %v390_v7, %v59_v19  ;;  %v72_v20 = vld [vmem:[%s752_s0 + $0x1d0] sm:$0xff] }
  0x2d   :  { %v259_v35 = vmax.f32 %v195_v27, 0.0  ;;  %v260_v36 = vmax.f32 %v196_v28, 0.0  ;;  %v130_v37 = vmul.f32 %v388_v6, %v60_v24  ;;  %v131_v38 = vmul.f32 %v390_v7, %v61_v25  ;;  %v73_v24 = vld [vmem:[%s752_s0 + $0x1d8] sm:$0xff] }
  0x2e   :  { %v323_v40 = vmax.f32 %v300_v26, %v301_v30  ;;  %v261_v41 = vmax.f32 %v197_v31, 0.0  ;;  %v198_v42 = vadd.f32 %v392_v8, %v128_v29  ;;  %v199_v43 = vadd.f32 %v394_v9, %v129_v33  ;;  %v74_v30 = vld [vmem:[%s752_s0 + $0x1e0] sm:$0xff] }
  0x2f   :  { %v302_v46 = vmax.f32 %v258_v32, %v260_v36  ;;  %v200_v47 = vadd.f32 %v392_v8, %v130_v37  ;;  %v201_v48 = vadd.f32 %v394_v9, %v131_v38  ;;  %v132_v49 = vmul.f32 %v388_v6, %v62_v34 }
  0x30   :  { %339 = vst [vmem:[%s755_s3 + $0x48] sm:$0xff] %v323_v40  ;;  %v303_v51 = vmax.f32 %v259_v35, %v261_v41  ;;  %v262_v52 = vmax.f32 %v198_v42, 0.0  ;;  %v263_v53 = vmax.f32 %v199_v43, 0.0  ;;  %v133_v54 = vmul.f32 %v390_v7, %v63_v39  ;;  %v75_v35 = vld [vmem:[%s752_s0 + $0x1e8] sm:$0xff]  ;;  %v76_v40 = vld [vmem:[%s752_s0 + $0x1f0] sm:$0xff]  ;;  %v77_v41 = vld [vmem:[%s752_s0 + $0x1f8] sm:$0xff] }
  0x31   :  { %v264_v55 = vmax.f32 %v200_v47, 0.0  ;;  %v265_v56 = vmax.f32 %v201_v48, 0.0  ;;  %v134_v57 = vmul.f32 %v388_v6, %v64_v44  ;;  %v135_v58 = vmul.f32 %v390_v7, %v65_v45 }
  0x32   :  { %v324_v61 = vmax.f32 %v302_v46, %v303_v51  ;;  %v202_v62 = vadd.f32 %v392_v8, %v132_v49  ;;  %v203_v63 = vadd.f32 %v394_v9, %v133_v54  ;;  %v136_v1 = vmul.f32 %v388_v6, %v66_v50 }
  0x33   :  { %v304_v2 = vmax.f32 %v262_v52, %v264_v55  ;;  %v305_v3 = vmax.f32 %v263_v53, %v265_v56  ;;  %v204_v4 = vadd.f32 %v392_v8, %v134_v57  ;;  %v205_v5 = vadd.f32 %v394_v9, %v135_v58 }
  0x34   :  { %340 = vst [vmem:[%s755_s3 + $0x50] sm:$0xff] %v324_v61  ;;  %v266_v11 = vmax.f32 %v202_v62, 0.0  ;;  %v267_v12 = vmax.f32 %v203_v63, 0.0  ;;  %v137_v13 = vmul.f32 %v390_v7, %v67_v59  ;;  %v138_v14 = vmul.f32 %v388_v6, %v68_v60 }
  0x35   :  { %v325_v16 = vmax.f32 %v304_v2, %v305_v3  ;;  %v268_v17 = vmax.f32 %v204_v4, 0.0  ;;  %v269_v18 = vmax.f32 %v205_v5, 0.0  ;;  %v139_v19 = vmul.f32 %v390_v7, %v69_v0 }
  0x36   :  { %v206_v21 = vadd.f32 %v392_v8, %v136_v1  ;;  %v207_v22 = vadd.f32 %v394_v9, %v137_v13  ;;  %v208_v23 = vadd.f32 %v392_v8, %v138_v14  ;;  %v140_v25 = vmul.f32 %v388_v6, %v70_v10 }
  0x37   :  { %341 = vst [vmem:[%s755_s3 + $0x58] sm:$0xff] %v325_v16  ;;  %v306_v26 = vmax.f32 %v266_v11, %v268_v17  ;;  %v307_v27 = vmax.f32 %v267_v12, %v269_v18  ;;  %v209_v28 = vadd.f32 %v394_v9, %v139_v19  ;;  %v141_v29 = vmul.f32 %v390_v7, %v71_v15 }
  0x38   :  { %v270_v31 = vmax.f32 %v206_v21, 0.0  ;;  %v271_v32 = vmax.f32 %v207_v22, 0.0  ;;  %v272_v33 = vmax.f32 %v208_v23, 0.0  ;;  %v142_v34 = vmul.f32 %v388_v6, %v72_v20 }
  0x39   :  { %v326_v36 = vmax.f32 %v306_v26, %v307_v27  ;;  %v273_v37 = vmax.f32 %v209_v28, 0.0  ;;  %v143_v38 = vmul.f32 %v390_v7, %v73_v24  ;;  %v210_v39 = vadd.f32 %v392_v8, %v140_v25 }
  0x3a   :  { %v308_v42 = vmax.f32 %v270_v31, %v272_v33  ;;  %v211_v43 = vadd.f32 %v394_v9, %v141_v29  ;;  %v212_v44 = vadd.f32 %v392_v8, %v142_v34  ;;  %v144_v45 = vmul.f32 %v388_v6, %v74_v30 }
  0x3b   :  { %342 = vst [vmem:[%s755_s3 + $0x60] sm:$0xff] %v326_v36  ;;  %v309_v46 = vmax.f32 %v271_v32, %v273_v37  ;;  %v213_v47 = vadd.f32 %v394_v9, %v143_v38  ;;  %v274_v48 = vmax.f32 %v210_v39, 0.0  ;;  %v145_v49 = vmul.f32 %v390_v7, %v75_v35 }
  0x3c   :  { %v275_v50 = vmax.f32 %v211_v43, 0.0  ;;  %v276_v51 = vmax.f32 %v212_v44, 0.0  ;;  %v146_v52 = vmul.f32 %v388_v6, %v76_v40  ;;  %v147_v53 = vmul.f32 %v390_v7, %v77_v41 }
  0x3d   :  { %v327_v54 = vmax.f32 %v308_v42, %v309_v46  ;;  %v277_v55 = vmax.f32 %v213_v47, 0.0  ;;  %v214_v56 = vadd.f32 %v392_v8, %v144_v45  ;;  %v215_v57 = vadd.f32 %v394_v9, %v145_v49 }
  0x3e   :  { %v310_v58 = vmax.f32 %v274_v48, %v276_v51  ;;  %v216_v59 = vadd.f32 %v392_v8, %v146_v52  ;;  %v217_v60 = vadd.f32 %v394_v9, %v147_v53 }
  0x3f   :  { %343 = vst [vmem:[%s755_s3 + $0x68] sm:$0xff] %v327_v54  ;;  %v311_v61 = vmax.f32 %v275_v50, %v277_v55  ;;  %v278_v62 = vmax.f32 %v214_v56, 0.0  ;;  %v279_v6 = vmax.f32 %v215_v57, 0.0 }
  0x40   :  { %v280_v63 = vmax.f32 %v216_v59, 0.0  ;;  %v281_v7 = vmax.f32 %v217_v60, 0.0 }
  0x41   :  { %v328_v0 = vmax.f32 %v310_v58, %v311_v61 }
  0x42   :  { %v312_v1 = vmax.f32 %v278_v62, %v280_v63  ;;  %v313_v2 = vmax.f32 %v279_v6, %v281_v7 }
  0x43   :  { %344 = vst [vmem:[%s755_s3 + $0x70] sm:$0xff] %v328_v0 }
  0x44   :  { %v329_v3 = vmax.f32 %v312_v1, %v313_v2 }
  0x46   :  { %345 = vst [vmem:[%s755_s3 + $0x78] sm:$0xff] %v329_v3 }

// kernel: conv_block_forward.2
= control target key start
LH: loop header
LB: loop body
LE: loop exit
PB: predicated region body
PF: predicated region fallthrough
CT: control target
= control target key end

     0   :  { %s907_s12 = smov 0   ;;  %s1118_s0 = inlined_call_operand.vmem [shape: bf16[4,80,16], index: 0, kind: input, shape index: {}]   ;;  %s1119_s1 = inlined_call_operand.vmem [shape: bf16[3,16,256], index: 1, kind: input, shape index: {}]   ;;  %s1120_s2 = inlined_call_operand.vmem [shape: f32[256,256], index: 2, kind: output, shape index: {0}]   ;;  %s1121_s3 = inlined_call_operand.vmem [shape: f32[4,2,256], index: 3, kind: output, shape index: {1}]  }
   0x1 LB: > { %s913_s13 = sadd.s32 4294967295, %s885_s12   ;;  %p731_p0 = scmp.ge.s32.totalorder %s885_s12, 1  ;;  %s885_s12 = sphi %s907_s12, %s14_s12  }
   0x2   : > { %p140_p1 = scmp.lt.s32.totalorder %s885_s12, 5 }
   0x4   : > { %p141_p2 = pnand %p731_p0, %p140_p1 }
   0x5   : > { %p170_p3 = scmp.lt.s32.totalorder (!%p141_p2), %s913_s13, 3  ;;  %s733_s18 = sshll.u32 (!%p141_p2), %s913_s13, 3 }
   0x6   : > { %144 = sbr.rel (%p141_p2) target bundleno = 297 (0x129), region = 28  ;;  %p176_p4 = scmp.lt.s32.totalorder (!%p141_p2), %s733_s18, 31 }
   0xb   : > { %v742_v0 = vld [vmem:[%s1119_s1 + $0x10] sm:$0xf]  ;;  %v814_v1 = vld [vmem:[%s1119_s1 + $0x14] sm:$0xf0]  ;;  %v813_v2 = vld [vmem:[%s1119_s1 + $0x14] sm:$0xf] }
   0xc   : > { %v743_v3 = vor.u32 %v814_v1, %v742_v0  ;;  %v744_v4 = vld [vmem:[%s1119_s1 + $0x18] sm:$0xf0]  ;;  %v811_v5 = vld [vmem:[%s1119_s1 + $0x4] sm:$0xf]  ;;  %v760_v7 = vld [vmem:[%s1119_s1 + $0x8] sm:$0xf0] }
   0xd   : > { %v747_v6 = vor.u32 %v813_v2, %v744_v4  ;;  %v758_v8 = vld [vmem:[%s1119_s1] sm:$0xf]  ;;  %v812_v9 = vld [vmem:[%s1119_s1 + $0x4] sm:$0xf0]  ;;  %s943_s30 = scalar_select %p170_p3, %s913_s13, 3  ;;  %v763_v10 = vor.u32 %v811_v5, %v760_v7  ;;  %vm232_vm0 = vcmask 130048  }
   0xe   : > { %860 = vmatpush.bf16.msra.mxu2 %v743_v3  ;;  %252 = vmatpush.bf16.msra.mxu0 %v743_v3  ;;  %v759_v11 = vor.u32 %v812_v9, %v758_v8  ;;  %v819_v12 = vld [vmem:[%s1119_s1 + $0x24] sm:$0xf]  ;;  %v794_v13 = vld [vmem:[%s1119_s1 + $0x28] sm:$0xf0]  ;;  %v792_v15 = vld [vmem:[%s1119_s1 + $0x20] sm:$0xf] }
   0xf   : > { %281 = vmatpush.bf16.msra.mxu1 %v747_v6  ;;  %861 = vmatpush.bf16.msra.mxu3 %v747_v6  ;;  %v797_v14 = vor.u32 %v819_v12, %v794_v13  ;;  %v820_v16 = vld [vmem:[%s1119_s1 + $0x24] sm:$0xf0]  ;;  %s870_s14 = smul.u32 40, %s943_s30  ;;  %s1125_s18 = smov (!%p176_p4, %s733_s18), 31  ;;  %vm579_vm1 = vcmask 1040384  }
  0x10   : > { %v793_v17 = vor.u32 %v820_v16, %v792_v15  ;;  %s809_s19 = sshll.u32 %s1125_s18, 4  ;;  %s810_s13 = sshll.u32 %s943_s30, 2 }
  0x11   : > { %s961_s17 = scalar_lea.vmem %s1118_s0, %s870_s14  ;;  %s1017_s22 = scalar_lea.vmem %s1120_s2, %s809_s19 }
  0x12   : > { %338 = vmatpush.bf16.msrb.mxu2 %v759_v11  ;;  %449 = vmatpush.bf16.msrb.mxu0 %v793_v17  ;;  %v868_v18 = vld [vmem:[%s961_s17 + $0x14] sm:$0xff]   ;;  %v864_v19 = vld [vmem:[%s961_s17 + $0x4] sm:$0xff]   ;;  %v869_v20 = vld [vmem:[%s961_s17 + $0x1c] sm:$0xff]  ;;  %s1099_s25 = scalar_lea.vmem %s1121_s3, %s810_s13 }
  0x13   : > { %367 = vmatpush.bf16.msrb.mxu3 %v763_v10  ;;  %478 = vmatpush.bf16.msrb.mxu1 %v797_v14  ;;  %v866_v21 = vld [vmem:[%s961_s17 + $0xc] sm:$0xff]   ;;  %v822_v23 = vld [vmem:[%s961_s17] sm:$0xff]   ;;  %v817_v26 = vld [vmem:[%s961_s17 + $0x18] sm:$0xff] }
  0x14   : > { %750 = vmatmul.msk.bf16.vlgmr.msra.gmra.mxu2 %vm232_vm0, %v868_v18  ;;  %752 = vmatmul.msk.bf16.vlgmr.msra.gmra.mxu1 %vm232_vm0, %v864_v19  ;;  %v815_v22 = vld [vmem:[%s961_s17 + $0x8] sm:$0xff]  ;;  %v816_v24 = vld [vmem:[%s961_s17 + $0x10] sm:$0xff]  ;;  %v818_v28 = vld [vmem:[%s961_s17 + $0x20] sm:$0xff] }
  0x15   : > { %754 = vmatmul.msk.bf16.vlgmr.msra.gmra.mxu3 %vm232_vm0, %v868_v18  ;;  %748 = vmatmul.msk.bf16.vlgmr.msra.gmra.mxu0 %vm232_vm0, %v864_v19  ;;  %v837_v25 = vld [vmem:[%s961_s17 + $0x8] sm:$0xff]   ;;  %v838_v27 = vld [vmem:[%s961_s17 + $0x10] sm:$0xff]   ;;  %v839_v29 = vld [vmem:[%s961_s17 + $0x18] sm:$0xff]  }
  0x24   : > { %751 = vmatmul.msk.bf16.gmra.mxu2 %vm232_vm0, %v869_v20  ;;  %753 = vmatmul.msk.bf16.gmra.mxu1 %vm232_vm0, %v866_v21 }
  0x25   : > { %755 = vmatmul.msk.bf16.gmra.mxu3 %vm232_vm0, %v869_v20  ;;  %749 = vmatmul.msk.bf16.gmra.mxu0 %vm232_vm0, %v866_v21 }
  0x34   : > { %764 = vmatmul.msk.bf16.vlgmr.msrb.gmra.mxu2 %vm232_vm0, %v822_v23  ;;  %802 = vmatmul.msk.bf16.vlgmr.msrb.gmra.mxu1 %vm232_vm0, %v815_v22 }
  0x35   : > { %768 = vmatmul.msk.bf16.vlgmr.msrb.gmra.mxu3 %vm232_vm0, %v822_v23  ;;  %798 = vmatmul.msk.bf16.vlgmr.msrb.gmra.mxu0 %vm232_vm0, %v815_v22 }
  0x44   : > { %765 = vmatmul.msk.bf16.gmra.mxu2 %vm232_vm0, %v837_v25  ;;  %803 = vmatmul.msk.bf16.gmra.mxu1 %vm232_vm0, %v816_v24 }
  0x45   : > { %769 = vmatmul.msk.bf16.gmra.mxu3 %vm232_vm0, %v837_v25  ;;  %799 = vmatmul.msk.bf16.gmra.mxu0 %vm232_vm0, %v816_v24 }
  0x54   : > { %766 = vmatmul.msk.bf16.gmra.mxu2 %vm232_vm0, %v838_v27  ;;  %804 = vmatmul.msk.bf16.gmra.mxu1 %vm232_vm0, %v817_v26 }
  0x55   : > { %770 = vmatmul.msk.bf16.gmra.mxu3 %vm232_vm0, %v838_v27  ;;  %800 = vmatmul.msk.bf16.gmra.mxu0 %vm232_vm0, %v817_v26 }
  0x64   : > { %767 = vmatmul.msk.bf16.gmra.mxu2 %vm232_vm0, %v839_v29  ;;  %805 = vmatmul.msk.bf16.gmra.mxu1 %vm232_vm0, %v818_v28 }
  0x65   : > { %771 = vmatmul.msk.bf16.gmra.mxu3 %vm232_vm0, %v839_v29  ;;  %801 = vmatmul.msk.bf16.gmra.mxu0 %vm232_vm0, %v818_v28 }
  0x91   : > { %v283_v30 = vpop.f32.mrf.mxu1 }
  0x92   : > { %v254_v31 = vpop.f32.mrf.mxu0 }
  0x97   : > { %v264_v32 = vpop.f32.mrf.mxu2 }
  0x98   : > { %v999_v33 = vpop.f32.mrf.mxu3 }
  0x99   : > { %v285_v34 = vpop.f32.mrf.mxu1 }
  0x9a   : > { %v256_v35 = vpop.f32.mrf.mxu0 }
  0x9f   : > { %v1001_v36 = vpop.f32.mrf.mxu2 }
  0xa0   : > { %v1003_v37 = vpop.f32.mrf.mxu3 }
  0xa1   : > { %v288_v38 = vpop.f32.mrf.mxu1 }
  0xa2   : > { %v259_v39 = vpop.f32.mrf.mxu0 }
  0xa7   : > { %v1005_v40 = vpop.f32.mrf.mxu2 }
  0xa8   : > { %v1007_v41 = vpop.f32.mrf.mxu3 }
  0xa9   : > { %v290_v42 = vpop.f32.mrf.mxu1 }
  0xaa   : > { %v261_v43 = vpop.f32.mrf.mxu0 }
  0xaf   : > { %v1010_v44 = vpop.f32.mrf.mxu2 }
  0xb0   : > { %v1012_v45 = vpop.f32.mrf.mxu3 }
  0xb1   : > { %v480_v46 = vpop.f32.mrf.mxu1 }
  0xb2   : > { %v451_v47 = vpop.f32.mrf.mxu0 }
  0xb7   : > { %v340_v48 = vpop.f32.mrf.mxu2 }
  0xb8   : > { %v341_v49 = vadd.f32 %v340_v48, %v254_v31  ;;  %v369_v50 = vpop.f32.mrf.mxu3 }
  0xb9   : > { %v370_v51 = vadd.f32 %v369_v50, %v283_v30  ;;  %v482_v52 = vpop.f32.mrf.mxu1 }
  0xba   : > { %v1019_v53 = vadd.f32 %v451_v47, %v341_v49  ;;  %v453_v54 = vpop.f32.mrf.mxu0 }
  0xbb   : > { %v1021_v55 = vadd.f32 %v480_v46, %v370_v51 }
  0xbc   : > { %516 = vst [vmem:[%s1017_s22] sm:$0xff] %v1019_v53 }
  0xbd   : > { %517 = vst [vmem:[%s1017_s22 + $0x8] sm:$0xff] %v1021_v55 }
  0xbf   : > { %v342_v56 = vpop.f32.mrf.mxu2 }
  0xc0   : > { %v343_v57 = vadd.f32 %v342_v56, %v256_v35  ;;  %v371_v58 = vpop.f32.mrf.mxu3 }
  0xc1   : > { %v372_v59 = vadd.f32 %v371_v58, %v285_v34  ;;  %v485_v60 = vpop.f32.mrf.mxu1 }
  0xc2   : > { %v1027_v61 = vadd.f32 %v453_v54, %v343_v57  ;;  %v456_v62 = vpop.f32.mrf.mxu0 }
  0xc3   : > { %v1029_v63 = vadd.f32 %v482_v52, %v372_v59 }
  0xc4   : > { %518 = vst [vmem:[%s1017_s22 + $0x10] sm:$0xff] %v1027_v61  ;;  %v532_v22 = vadd.f32 %v1027_v61, %v1019_v53 }
  0xc5   : > { %519 = vst [vmem:[%s1017_s22 + $0x18] sm:$0xff] %v1029_v63  ;;  %v545_v23 = vadd.f32 %v1029_v63, %v1021_v55 }
  0xc7   : > { %v345_v0 = vpop.f32.mrf.mxu2 }
  0xc8   : > { %v346_v1 = vadd.f32 %v345_v0, %v259_v39  ;;  %v374_v2 = vpop.f32.mrf.mxu3 }
  0xc9   : > { %v375_v3 = vadd.f32 %v374_v2, %v288_v38  ;;  %v487_v5 = vpop.f32.mrf.mxu1 }
  0xca   : > { %v1035_v4 = vadd.f32 %v456_v62, %v346_v1  ;;  %v458_v6 = vpop.f32.mrf.mxu0 }
  0xcb   : > { %v1037_v7 = vadd.f32 %v485_v60, %v375_v3 }
  0xcc   : > { %520 = vst [vmem:[%s1017_s22 + $0x20] sm:$0xff] %v1035_v4  ;;  %v533_v25 = vadd.f32 %v532_v22, %v1035_v4 }
  0xcd   : > { %521 = vst [vmem:[%s1017_s22 + $0x28] sm:$0xff] %v1037_v7  ;;  %v546_v27 = vadd.f32 %v545_v23, %v1037_v7 }
  0xcf   : > { %v347_v8 = vpop.f32.mrf.mxu2 }
  0xd0   : > { %v348_v9 = vadd.f32 %v347_v8, %v261_v43  ;;  %v376_v10 = vpop.f32.mrf.mxu3 }
  0xd1   : > { %v377_v11 = vadd.f32 %v376_v10, %v290_v42  ;;  %v490_v15 = vpop.f32.mrf.mxu1 }
  0xd2   : > { %v1043_v12 = vadd.f32 %v458_v6, %v348_v9  ;;  %v461_v14 = vpop.f32.mrf.mxu0 }
  0xd3   : > { %v1045_v13 = vadd.f32 %v487_v5, %v377_v11 }
  0xd4   : > { %522 = vst [vmem:[%s1017_s22 + $0x30] sm:$0xff] %v1043_v12  ;;  %v534_v29 = vadd.f32 %v533_v25, %v1043_v12 }
  0xd5   : > { %523 = vst [vmem:[%s1017_s22 + $0x38] sm:$0xff] %v1045_v13 }
  0xd7   : > { %v350_v16 = vpop.f32.mrf.mxu2 }
  0xd8   : > { %v351_v17 = vadd.f32 %v350_v16, %v264_v32  ;;  %v379_v18 = vpop.f32.mrf.mxu3  ;;  %v547_v32 = vadd.f32 %v546_v27, %v1045_v13 }
  0xd9   : > { %v380_v19 = vadd.f32 %v379_v18, %v999_v33  ;;  %v492_v26 = vpop.f32.mrf.mxu1  ;;  %v582_v18 = vlaneseq }
  0xda   : > { %v1052_v20 = vadd.f32 %v461_v14, %v351_v17  ;;  %v463_v24 = vpop.f32.mrf.mxu0 }
  0xdb   : > { %v1054_v21 = vadd.f32 %v490_v15, %v380_v19  ;;  %vm1092_vm2 = vcmp.lt.s32.totalorder %v582_v18, 256 }
  0xdc   : > { %524 = vst [vmem:[%s1017_s22 + $0x40] sm:$0xff] %v1052_v20  ;;  %v535_v34 = vadd.f32 %v534_v29, %v1052_v20 }
  0xdd   : > { %525 = vst [vmem:[%s1017_s22 + $0x48] sm:$0xff] %v1054_v21  ;;  %v548_v38 = vadd.f32 %v547_v32, %v1054_v21 }
  0xdf   : > { %v352_v28 = vpop.f32.mrf.mxu2 }
  0xe0   : > { %v353_v30 = vadd.f32 %v352_v28, %v1001_v36  ;;  %v381_v31 = vpop.f32.mrf.mxu3 }
  0xe1   : > { %v382_v33 = vadd.f32 %v381_v31, %v1003_v37  ;;  %v495_v47 = vpop.f32.mrf.mxu1 }
  0xe2   : > { %v510_v35 = vadd.f32 %v463_v24, %v353_v30  ;;  %v466_v43 = vpop.f32.mrf.mxu0 }
  0xe3   : > { %v1072_v39 = vadd.f32 %v492_v26, %v382_v33 }
  0xe4   : > { %526 = vst [vmem:[%s1017_s22 + $0x50] sm:$0xff] %v510_v35  ;;  %v536_v42 = vadd.f32 %v535_v34, %v510_v35 }
  0xe5   : > { %527 = vst [vmem:[%s1017_s22 + $0x58] sm:$0xff] %v1072_v39  ;;  %v549_v36 = vadd.f32 %v548_v38, %v1072_v39 }
  0xe7   : > { %v355_v46 = vpop.f32.mrf.mxu2 }
  0xe8   : > { %v356_v37 = vadd.f32 %v355_v46, %v1005_v40  ;;  %v384_v48 = vpop.f32.mrf.mxu3 }
  0xe9   : > { %v385_v49 = vadd.f32 %v384_v48, %v1007_v41  ;;  %v497_v62 = vpop.f32.mrf.mxu1 }
  0xea   : > { %v512_v50 = vadd.f32 %v466_v43, %v356_v37  ;;  %v468_v59 = vpop.f32.mrf.mxu0 }
  0xeb   : > { %v513_v51 = vadd.f32 %v495_v47, %v385_v49 }
  0xec   : > { %528 = vst [vmem:[%s1017_s22 + $0x60] sm:$0xff] %v512_v50  ;;  %v537_v52 = vadd.f32 %v536_v42, %v512_v50 }
  0xed   : > { %529 = vst [vmem:[%s1017_s22 + $0x68] sm:$0xff] %v513_v51  ;;  %v550_v54 = vadd.f32 %v549_v36, %v513_v51 }
  0xef   : > { %v357_v56 = vpop.f32.mrf.mxu2 }
  0xf0   : > { %v358_v57 = vadd.f32 %v357_v56, %v1010_v44  ;;  %v386_v58 = vpop.f32.mrf.mxu3 }
  0xf1   : > { %v387_v60 = vadd.f32 %v386_v58, %v1012_v45 }
  0xf2   : > { %v514_v40 = vadd.f32 %v468_v59, %v358_v57 }
  0xf3   : > { %v515_v0 = vadd.f32 %v497_v62, %v387_v60 }
  0xf4   : > { %530 = vst [vmem:[%s1017_s22 + $0x70] sm:$0xff] %v514_v40  ;;  %v538_v1 = vadd.f32 %v537_v52, %v514_v40 }
  0xf5   : > { %531 = vst [vmem:[%s1017_s22 + $0x78] sm:$0xff] %v515_v0  ;;  %v551_v41 = vadd.f32 %v550_v54, %v515_v0 }
  0xf6   : > { %v539_v2 = vrot.slane %v538_v1, 4 }
  0xf7   : > { %v552_v3 = vrot.slane %v551_v41, 4 }
  0xf8   : > { %v540_v5 = vadd.f32 %v539_v2, %v538_v1 }
  0xf9   : > { %v553_v6 = vadd.f32 %v552_v3, %v551_v41 }
  0xfa   : > { %v541_v8 = vrot.slane %v540_v5, 2 }
  0xfb   : > { %v554_v9 = vrot.slane %v553_v6, 2 }
  0xfc   : > { %v542_v10 = vadd.f32 %v541_v8, %v540_v5 }
  0xfd   : > { %v555_v11 = vadd.f32 %v554_v9, %v553_v6 }
  0xfe   : > { %v543_v44 = vrot.slane %v542_v10, 1 }
  0xff   : > { %v556_v14 = vrot.slane %v555_v11, 1 }
 0x100   : > { %v544_v15 = vadd.f32 %v543_v44, %v542_v10 }
 0x101   : > { %v557_v45 = vadd.f32 %v556_v14, %v555_v11 }
 0x102   : > { %v558_v16 = vmul.f32 0.015625, %v544_v15 }
 0x103   : > { %v559_v17 = vmul.f32 0.015625, %v557_v45  ;;  %v578_v31 = vrot.slane %v557_v45, 7 }
 0x104   : > { %v560_v19 = vsub.f32 %v1019_v53, %v558_v16  ;;  %v562_v22 = vsub.f32 %v1027_v61, %v558_v16  ;;  %v564_v23 = vsub.f32 %v1035_v4, %v558_v16  ;;  %v566_v24 = vsub.f32 %v1043_v12, %v558_v16 }
 0x105   : > { %v568_v25 = vsub.f32 %v1052_v20, %v558_v16  ;;  %v570_v26 = vsub.f32 %v510_v35, %v558_v16  ;;  %v572_v27 = vsub.f32 %v512_v50, %v558_v16  ;;  %v574_v28 = vsub.f32 %v514_v40, %v558_v16 }
 0x106   : > { %v587_v29 = vmul.f32 %v560_v19, %v560_v19  ;;  %v589_v30 = vmul.f32 %v562_v22, %v562_v22  ;;  %v591_v32 = vmul.f32 %v564_v23, %v564_v23  ;;  %v593_v53 = vmul.f32 %v566_v24, %v566_v24 }
 0x107   : > { %v561_v4 = vsub.f32 %v1021_v55, %v559_v17  ;;  %v563_v12 = vsub.f32 %v1029_v63, %v559_v17  ;;  %v565_v20 = vsub.f32 %v1037_v7, %v559_v17  ;;  %v569_v34 = vsub.f32 %v1054_v21, %v559_v17 }
 0x108   : > { %v603_v61 = vadd.f32 %v589_v30, %v587_v29  ;;  %v571_v35 = vsub.f32 %v1072_v39, %v559_v17  ;;  %v573_v38 = vsub.f32 %v513_v51, %v559_v17  ;;  %v575_v36 = vsub.f32 %v515_v0, %v559_v17 }
 0x109   : > { %v580_v43 = vsel %vm579_vm1, %v544_v15, %v578_v31  ;;  %v588_v46 = vmul.f32 %v561_v4, %v561_v4  ;;  %v567_v47 = vsub.f32 %v1045_v13, %v559_v17  ;;  %v590_v55 = vmul.f32 %v563_v12, %v563_v12 }
 0x10a   : > { %v604_v42 = vadd.f32 %v603_v61, %v591_v32  ;;  %586 = vst.msk [vmem:[%s1099_s25] ss:$2 sm:$0x3] %vm1092_vm2, %v580_v43  ;;  %v595_v37 = vmul.f32 %v568_v25, %v568_v25  ;;  %v592_v48 = vmul.f32 %v565_v20, %v565_v20  ;;  %v597_v49 = vmul.f32 %v570_v26, %v570_v26 }
 0x10b   : > { %v616_v7 = vadd.f32 %v590_v55, %v588_v46  ;;  %v594_v50 = vmul.f32 %v567_v47, %v567_v47  ;;  %v599_v51 = vmul.f32 %v572_v27, %v572_v27  ;;  %v596_v54 = vmul.f32 %v569_v34, %v569_v34 }
 0x10c   : > { %v605_v63 = vadd.f32 %v604_v42, %v593_v53  ;;  %v601_v57 = vmul.f32 %v574_v28, %v574_v28  ;;  %v598_v59 = vmul.f32 %v571_v35, %v571_v35  ;;  %v600_v62 = vmul.f32 %v573_v38, %v573_v38 }
 0x10d   : > { %v617_v39 = vadd.f32 %v616_v7, %v592_v48  ;;  %v602_v1 = vmul.f32 %v575_v36, %v575_v36 }
 0x10e   : > { %v606_v21 = vadd.f32 %v605_v63, %v595_v37 }
 0x10f   : > { %v618_v56 = vadd.f32 %v617_v39, %v594_v50 }
 0x110   : > { %v607_v52 = vadd.f32 %v606_v21, %v597_v49 }
 0x111   : > { %v619_v13 = vadd.f32 %v618_v56, %v596_v54 }
 0x112   : > { %v608_v58 = vadd.f32 %v607_v52, %v599_v51 }
 0x113   : > { %v620_v40 = vadd.f32 %v619_v13, %v598_v59 }
 0x114   : > { %v609_v60 = vadd.f32 %v608_v58, %v601_v57 }
 0x115   : > { %v621_v41 = vadd.f32 %v620_v40, %v600_v62 }
 0x116   : > { %v610_v0 = vrot.slane %v609_v60, 4 }
 0x117   : > { %v622_v3 = vadd.f32 %v621_v41, %v602_v1 }
 0x118   : > { %v611_v2 = vadd.f32 %v610_v0, %v609_v60 }
 0x119   : > { %v623_v6 = vrot.slane %v622_v3, 4 }
 0x11a   : > { %v612_v5 = vrot.slane %v611_v2, 2 }
 0x11b   : > { %v624_v8 = vadd.f32 %v623_v6, %v622_v3 }
 0x11c   : > { %v613_v9 = vadd.f32 %v612_v5, %v611_v2 }
 0x11d   : > { %v625_v10 = vrot.slane %v624_v8, 2 }
 0x11e   : > { %v614_v44 = vrot.slane %v613_v9, 1 }
 0x11f   : > { %v626_v11 = vadd.f32 %v625_v10, %v624_v8 }
 0x120   : > { %v615_v45 = vadd.f32 %v614_v44, %v613_v9 }
 0x121   : > { %v627_v14 = vrot.slane %v626_v11, 1 }
 0x123   : > { %v628_v15 = vadd.f32 %v627_v14, %v626_v11 }
 0x125   : > { %v631_v16 = vrot.slane %v628_v15, 7 }
 0x127   : > { %v632_v17 = vsel %vm579_vm1, %v615_v45, %v631_v16 }
 0x128   : > { %806 = vst.msk [vmem:[%s1099_s25 + $0x1] ss:$2 sm:$0x3] %vm1092_vm2, %v632_v17 }
 0x129 PF: > { %s14_s12 = sadd.s32 1, %s885_s12  }
 0x12a   : > { %p11_p5 = scmp.ge.s32.totalorder %s14_s12, 6  }
 0x12c   :  { %13 = sbr.rel (!%p11_p5) target bundleno = 1 (0x1), region = 73 }

</bundles_post_ra>
